<compile_context>
chip_gen: v5e
topology: v5e:2x2
jax: 0.10.0
libtpu: 0.0.40
codegen_flags: <defaults>
</compile_context>

<pallas_src>
import functools

import jax
import jax.numpy as jnp
from jax import lax
from jax.experimental import pallas as pl
from jax.experimental.pallas import tpu as pltpu


_BATCH_TILE = 8                              # sublane-aligned batch tile
_ROW_TILE_CAP = 1024                         # kernel-2 max row tile
_RESIDENT_ACTS_BYTES = 24 * 1024 * 1024      # keep acts VMEM-resident below this
_VMEM_LIMIT = 48 * 1024 * 1024               # scoped VMEM; headroom on v7x (64 MiB)


def _round_up(x: int, m: int) -> int:
    return ((x + m - 1) // m) * m


def _pick_row_tile(m: int, cap: int = _ROW_TILE_CAP) -> int:
    """Largest row tile <= cap that divides m (m is a multiple of 8)."""
    if m <= cap:
        return m
    t = cap - cap % 8
    while m % t:
        t -= 8
    return t


# --------------------------------------------------------------------------- #
# Kernel 1: batch-tiled tanh-RNN recurrence with hoisted input projection.
# --------------------------------------------------------------------------- #
def _rnn_kernel(x_ref, len_ref, wih_ref, whh_ref, bias_ref, out_ref, xproj_scr,
                *, seq_len, unroll):
    """
    x_ref     : (L, Bt, E)  bf16   time-major embeddings for this batch tile
    len_ref   : (Bt, 1)     int32  sequence lengths (0 for padded batch rows)
    wih_ref   : (E, Hp)     bf16   W_ih^T (H zero-padded to Hp, mult of 128)
    whh_ref   : (Hp, Hp)    bf16   W_hh^T (zero-padded)
    bias_ref  : (1, Hp)     f32    b_ih + b_hh (padded cols zero)
    out_ref   : (L, Bt, Hp) bf16   masked hidden states, time-major
    xproj_scr : (L, Bt, Hp) f32    scratch: hoisted input projection (read-only
                                   after init)
    """
    l, bt, e = x_ref.shape
    hp = whh_ref.shape[1]

    # (1) Hoisted input projection: ONE MXU GEMM over all timesteps of the
    #     tile, fused combined bias — completely off the serial chain.  The
    #     reshapes only merge/split leading dims of sublane-aligned (Bt % 8 == 0)
    #     slabs, so they are layout-free.
    xp = jnp.dot(x_ref[...].reshape(l * bt, e), wih_ref[...],
                 preferred_element_type=jnp.float32) + bias_ref[...]
    xproj_scr[...] = xp.reshape(l, bt, hp)

    lens = len_ref[...]                                  # (Bt, 1) int32

    # (2) Recurrence: only h @ W_hh + tanh on the serial critical path.
    #     fori_loop with modest unroll keeps LLO scheduling visibility without
    #     the program-size blow-up of a full unroll; h stays in vregs.
    def step(t, h):
        pre = xproj_scr[t] + jnp.dot(h.astype(jnp.bfloat16), whh_ref[...],
                                     preferred_element_type=jnp.float32)
        h_new = jnp.tanh(pre)                            # f32 tanh (EUP)
        # (3) pack/pad semantics: zero the output at t >= length (its logits
        #     then equal the linear bias); masked h written straight to out_ref
        #     as an aligned (Bt, Hp) bf16 slab.  NOTE: h keeps evolving past
        #     lengths[b] (fed by the zero PAD embedding + bias); forward()
        #     never exposes h_n, so returned logits still match PyTorch.
        out_ref[t] = jnp.where(lens > t, h_new, 0.0).astype(out_ref.dtype)
        return h_new

    lax.fori_loop(0, seq_len, step, jnp.zeros((bt, hp), jnp.float32),
                  unroll=unroll)


# --------------------------------------------------------------------------- #
# Kernel 2: output projection (rows, Hp) @ (Hp, Vp) + bias.
# --------------------------------------------------------------------------- #
def _proj_resident_kernel(acts_ref, w_ref, b_ref, out_ref, *, tm):
    # Whole activation slab is VMEM-resident; grid = (vocab tiles, row tiles)
    # with vocab OUTERMOST, so each W_out / bias tile is DMA'd exactly once.
    i = pl.program_id(1)
    rows = acts_ref[pl.ds(pl.multiple_of(i * tm, tm), tm), :]
    out_ref[...] = (jnp.dot(rows, w_ref[...], preferred_element_type=jnp.float32)
                    + b_ref[...])


def _proj_tiled_kernel(acts_ref, w_ref, b_ref, out_ref):
    out_ref[...] = (jnp.dot(acts_ref[...], w_ref[...],
                            preferred_element_type=jnp.float32) + b_ref[...])


# --------------------------------------------------------------------------- #
# Wrapper
# --------------------------------------------------------------------------- #
@functools.partial(jax.jit, static_argnames=("vocab_size",))
def language_model_forward(indices, lengths, params, *, vocab_size):
    """indices: (B, L) int32; lengths: (B,) int32 (max(lengths) == L).
    Returns logits of shape (B, L, vocab_size), float32."""
    emb = params["embedding"]                        # (V, E) bf16, pad row zero
    B, L = indices.shape
    E = emb.shape[1]
    Hp = params["w_hh_t"].shape[0]                   # hidden padded to mult of 128
    Vp = params["w_out_t"].shape[1]                  # vocab padded to mult of 256

    bt = _BATCH_TILE
    Bp = _round_up(max(B, bt), bt)

    idx = indices.astype(jnp.int32)
    lens = lengths.astype(jnp.int32)
    if Bp != B:
        idx = jnp.pad(idx, ((0, Bp - B), (0, 0)))    # pad tokens -> padding_idx 0
        lens = jnp.pad(lens, ((0, Bp - B),))         # length 0 -> fully masked rows

    # Embedding gather directly in bf16 and in time-major order (no transpose
    # of the activation-sized array on the way in).
    tokens_tm = jnp.transpose(idx).reshape(-1)                       # (L*Bp,)
    x_tm = jnp.take(emb, tokens_tm, axis=0).reshape(L, Bp, E)        # bf16
    lens2d = lens.reshape(Bp, 1)

    # ---- Kernel 1: batch-tiled recurrence ---------------------------------- #
    outs_tm = pl.pallas_call(
        functools.partial(_rnn_kernel, seq_len=L, unroll=min(8, L)),
        out_shape=jax.ShapeDtypeStruct((L, Bp, Hp), jnp.bfloat16),
        grid=(Bp // bt,),
        in_specs=[
            pl.BlockSpec((L, bt, E), lambda i: (0, i, 0)),    # embeddings (tile)
            pl.BlockSpec((bt, 1), lambda i: (i, 0)),          # lengths (tile)
            pl.BlockSpec((E, Hp), lambda i: (0, 0)),          # W_ih^T (resident)
            pl.BlockSpec((Hp, Hp), lambda i: (0, 0)),         # W_hh^T (resident)
            pl.BlockSpec((1, Hp), lambda i: (0, 0)),          # b_ih + b_hh
        ],
        out_specs=pl.BlockSpec((L, bt, Hp), lambda i: (0, i, 0)),
        scratch_shapes=[pltpu.VMEM((L, bt, Hp), jnp.float32)],
        compiler_params=pltpu.CompilerParams(
            dimension_semantics=("parallel",),
            vmem_limit_bytes=_VMEM_LIMIT),
    )(x_tm, lens2d, params["w_ih_t"], params["w_hh_t"], params["b_rnn"])

    # Small batch-major reorder of the bf16 activations (XLA).  Keeping the
    # recurrence's per-step stores as unmasked time-major slabs and paying one
    # activation-sized transpose here is far cheaper than masked dynamic-sublane
    # stores on the serial path; this traffic is << the f32 logits write.
    acts = jnp.transpose(outs_tm, (1, 0, 2)).reshape(Bp * L, Hp)

    # ---- Kernel 2: output projection ---------------------------------------- #
    M = Bp * L                                      # multiple of 8 (Bp is)
    tn = 512 if Vp % 512 == 0 else 256              # Vp is a 256 multiple at init
    tm = _pick_row_tile(M)

    if acts.size * acts.dtype.itemsize <= _RESIDENT_ACTS_BYTES:
        # Activations fully VMEM-resident; vocab tiles outermost => W_out and
        # the activations each stream from HBM exactly once.
        logits_flat = pl.pallas_call(
            functools.partial(_proj_resident_kernel, tm=tm),
            out_shape=jax.ShapeDtypeStruct((M, Vp), jnp.float32),
            grid=(Vp // tn, M // tm),
            in_specs=[
                pl.BlockSpec(memory_space=pltpu.MemorySpace.VMEM),  # acts resident
                pl.BlockSpec((Hp, tn), lambda j, i: (0, j)),        # W_out^T tile
                pl.BlockSpec((1, tn), lambda j, i: (0, j)),         # bias tile
            ],
            out_specs=pl.BlockSpec((tm, tn), lambda j, i: (i, j)),
            compiler_params=pltpu.CompilerParams(
                dimension_semantics=("parallel", "parallel"),
                vmem_limit_bytes=_VMEM_LIMIT),
        )(acts, params["w_out_t"], params["b_out"])
    else:
        # Fallback for very large B*L: large row tiles, rows outermost so each
        # activation tile streams once (W_out re-streamed M/tm times).
        logits_flat = pl.pallas_call(
            _proj_tiled_kernel,
            out_shape=jax.ShapeDtypeStruct((M, Vp), jnp.float32),
            grid=(M // tm, Vp // tn),
            in_specs=[
                pl.BlockSpec((tm, Hp), lambda i, j: (i, 0)),
                pl.BlockSpec((Hp, tn), lambda i, j: (0, j)),
                pl.BlockSpec((1, tn), lambda i, j: (0, j)),
            ],
            out_specs=pl.BlockSpec((tm, tn), lambda i, j: (i, j)),
            compiler_params=pltpu.CompilerParams(
                dimension_semantics=("parallel", "parallel"),
                vmem_limit_bytes=_VMEM_LIMIT),
        )(acts, params["w_out_t"], params["b_out"])

    logits = logits_flat.reshape(Bp, L, Vp)
    if Bp != B:
        logits = logits[:B]
    if Vp != vocab_size:
        logits = logits[..., :vocab_size]
    return logits


def init_params(key, vocab_size, embed_size, hidden_size, pad_id=0):
    k = jax.random.split(key, 7)
    # nn.Embedding: N(0, 1); padding_idx row zeroed.
    embedding = jax.random.normal(k[0], (vocab_size, embed_size), jnp.float32)
    embedding = embedding.at[pad_id].set(0.0)
    # nn.RNN / nn.Linear: U(-1/sqrt(H), 1/sqrt(H))
    s = 1.0 / jnp.sqrt(hidden_size)
    u = lambda kk, shape: jax.random.uniform(kk, shape, jnp.float32, -s, s)
    w_ih = u(k[1], (hidden_size, embed_size))        # PyTorch weight_ih_l0
    w_hh = u(k[2], (hidden_size, hidden_size))       # PyTorch weight_hh_l0
    b_ih = u(k[3], (hidden_size,))
    b_hh = u(k[4], (hidden_size,))
    w_out = u(k[5], (vocab_size, hidden_size))       # nn.Linear weight
    b_out = u(k[6], (vocab_size,))

    # Zero-pad H to a multiple of 128 and V to a multiple of 256 so every
    # matmul / store is lane-dense (256/512-wide vocab tiles for v6e/v7x MXU).
    # Padding is exact: padded hidden cols stay 0 through the recurrence
    # (tanh(0)=0); padded W_out rows/cols and bias entries contribute nothing.
    hp = _round_up(hidden_size, 128)
    vp = _round_up(vocab_size, 256)

    w_ih_t = jnp.zeros((embed_size, hp), jnp.float32).at[:, :hidden_size].set(w_ih.T)
    w_hh_t = jnp.zeros((hp, hp), jnp.float32).at[:hidden_size, :hidden_size].set(w_hh.T)
    b_rnn = jnp.zeros((1, hp), jnp.float32).at[0, :hidden_size].set(b_ih + b_hh)
    w_out_t = jnp.zeros((hp, vp), jnp.float32).at[:hidden_size, :vocab_size].set(w_out.T)
    b_out_p = jnp.zeros((1, vp), jnp.float32).at[0, :vocab_size].set(b_out)

    return {
        "embedding": embedding.astype(jnp.bfloat16),   # bf16 (V, E), pad row zero
        "w_ih_t": w_ih_t.astype(jnp.bfloat16),          # bf16 (E, Hp)
        "w_hh_t": w_hh_t.astype(jnp.bfloat16),          # bf16 (Hp, Hp)
        "b_rnn": b_rnn,                                  # f32  (1, Hp) = b_ih + b_hh
        "w_out_t": w_out_t.astype(jnp.bfloat16),        # bf16 (Hp, Vp)
        "b_out": b_out_p,                                # f32  (1, Vp)
    }


def _reference_forward(indices, lengths, params, vocab_size):
    """Pure-JAX mirror of the kernels' numerics (bf16 weights, f32 accum)."""
    emb = params["embedding"].astype(jnp.float32)
    wih = params["w_ih_t"].astype(jnp.float32)
    whh = params["w_hh_t"].astype(jnp.float32)
    wout = params["w_out_t"].astype(jnp.float32)
    B, L = indices.shape
    hp = whh.shape[0]
    x = emb[indices]                                               # (B, L, E)
    xp = jnp.einsum("ble,eh->blh", x, wih) + params["b_rnn"][0]
    h = jnp.zeros((B, hp), jnp.float32)
    outs = []
    for t in range(L):
        h = jnp.tanh(xp[:, t] + h.astype(jnp.bfloat16).astype(jnp.float32) @ whh)
        outs.append(jnp.where((lengths > t)[:, None], h, 0.0))
    outs = jnp.stack(outs, axis=1).astype(jnp.bfloat16).astype(jnp.float32)
    logits = jnp.einsum("blh,hv->blv", outs, wout) + params["b_out"][0]
    return logits[..., :vocab_size]


if __name__ == "__main__":
    # Small shapes consistent with the module's forward.
    B, L = 2, 8
    VOCAB, EMBED, HIDDEN = 256, 64, 64
    PAD_ID = 0

    key = jax.random.PRNGKey(0)
    kp, ki = jax.random.split(key)
    params = init_params(kp, VOCAB, EMBED, HIDDEN, pad_id=PAD_ID)

    # Deterministic example inputs: token ids and per-sequence lengths
    # (max(lengths) == L, as pad_packed_sequence would produce).
    indices = jax.random.randint(ki, (B, L), 1, VOCAB, dtype=jnp.int32)
    lengths = jnp.array([L, 5], dtype=jnp.int32)
    pos = jnp.arange(L)[None, :]
    indices = jnp.where(pos < lengths[:, None], indices, PAD_ID)

    logits = language_model_forward(indices, lengths, params, vocab_size=VOCAB)
    logits = jax.block_until_ready(logits)

    # Sanity: shape, finiteness, pack/pad semantics, and numeric match vs. a
    # pure-JAX mirror of the same bf16-weight computation.
    assert logits.shape == (B, L, VOCAB)
    assert bool(jnp.all(jnp.isfinite(logits)))
    padded = logits[1, 5:, :]                      # positions t >= lengths[1]
    assert bool(jnp.allclose(padded, params["b_out"][0, :VOCAB], atol=1e-5))
    ref = _reference_forward(indices, lengths, params, VOCAB)
    assert float(jnp.max(jnp.abs(logits - ref))) < 0.1

    print("KERNEL_OK")
</pallas_src>

<mosaic_0001>
module attributes {stable_mosaic.version = 11 : i64} {
  func.func @_rnn_kernel(%arg0: i32, %arg1: memref<8x8x64xbf16, #tpu.memory_space<vmem>>, %arg2: memref<8x1xi32, #tpu.memory_space<vmem>>, %arg3: memref<64x128xbf16, #tpu.memory_space<vmem>>, %arg4: memref<128x128xbf16, #tpu.memory_space<vmem>>, %arg5: memref<1x128xf32, #tpu.memory_space<vmem>>, %arg6: memref<8x8x128xbf16, #tpu.memory_space<vmem>>, %arg7: memref<8x8x128xf32, #tpu.memory_space<vmem>>) attributes {dimension_semantics = [#tpu.dimension_semantics<parallel>], iteration_bounds = array<i64: 1>, scalar_prefetch = 0 : i64, scratch_operands = 1 : i64, tpu.core_type = #tpu.core_type<tc>, window_params = [{transform_indices = @transform_0, window_bounds = array<i64: 8, 8, 64>}, {transform_indices = @transform_1, window_bounds = array<i64: 8, 1>}, {pipeline_mode = #tpu.pipeline_mode<synchronous>, transform_indices = @transform_2, window_bounds = array<i64: 64, 128>}, {pipeline_mode = #tpu.pipeline_mode<synchronous>, transform_indices = @transform_3, window_bounds = array<i64: 128, 128>}, {pipeline_mode = #tpu.pipeline_mode<synchronous>, transform_indices = @transform_4, window_bounds = array<i64: 1, 128>}, {transform_indices = @transform_5, window_bounds = array<i64: 8, 8, 128>}]} {
    %c0 = arith.constant 0 : index
    %c0_0 = arith.constant 0 : index
    %c0_1 = arith.constant 0 : index
    %0 = vector.load %arg1[%c0, %c0_0, %c0_1] : memref<8x8x64xbf16, #tpu.memory_space<vmem>>, vector<8x8x64xbf16>
    %1 = vector.shape_cast %0 : vector<8x8x64xbf16> to vector<64x64xbf16>
    %c0_2 = arith.constant 0 : index
    %c0_3 = arith.constant 0 : index
    %2 = vector.load %arg3[%c0_2, %c0_3] : memref<64x128xbf16, #tpu.memory_space<vmem>>, vector<64x128xbf16>
    %cst = arith.constant dense<0.000000e+00> : vector<64x128xf32>
    %3 = tpu.matmul %1, %2, %cst {dimension_numbers = #tpu.dot_dimension_numbers<[1], [0], [0], [1], [0, 0, 1, 1], [], []>} : vector<64x64xbf16>, vector<64x128xbf16>, vector<64x128xf32> -> vector<64x128xf32>
    %c0_4 = arith.constant 0 : index
    %c0_5 = arith.constant 0 : index
    %4 = vector.load %arg5[%c0_4, %c0_5] : memref<1x128xf32, #tpu.memory_space<vmem>>, vector<1x128xf32>
    %5 = vector.broadcast %4 : vector<1x128xf32> to vector<64x128xf32>
    %6 = arith.addf %3, %5 : vector<64x128xf32>
    %7 = vector.shape_cast %6 : vector<64x128xf32> to vector<8x8x128xf32>
    %c0_6 = arith.constant 0 : index
    %c0_7 = arith.constant 0 : index
    %c0_8 = arith.constant 0 : index
    %8 = vector.load %arg7[%c0_6, %c0_7, %c0_8] : memref<8x8x128xf32, #tpu.memory_space<vmem>>, vector<8x8x128xf32>
    tpu.vector_store %arg7[%c0_6, %c0_7, %c0_8], %7 {strides = array<i32>} : memref<8x8x128xf32, #tpu.memory_space<vmem>>, vector<8x8x128xf32>,
    %c0_9 = arith.constant 0 : index
    %c0_10 = arith.constant 0 : index
    %9 = vector.load %arg2[%c0_9, %c0_10] : memref<8x1xi32, #tpu.memory_space<vmem>>, vector<8x1xi32>
    %cst_11 = arith.constant 0.000000e+00 : f32
    %10 = vector.broadcast %cst_11 : f32 to vector<8x128xf32>
    %c0_i32 = arith.constant 0 : i32
    %11 = arith.index_cast %c0_i32 : i32 to index
    %c0_12 = arith.constant 0 : index
    %c0_13 = arith.constant 0 : index
    %12 = vector.load %arg7[%11, %c0_12, %c0_13] : memref<8x8x128xf32, #tpu.memory_space<vmem>>, vector<1x8x128xf32>
    %13 = vector.shape_cast %12 : vector<1x8x128xf32> to vector<8x128xf32>
    %14 = arith.truncf %10 : vector<8x128xf32> to vector<8x128xbf16>
    %c0_14 = arith.constant 0 : index
    %c0_15 = arith.constant 0 : index
    %15 = vector.load %arg4[%c0_14, %c0_15] : memref<128x128xbf16, #tpu.memory_space<vmem>>, vector<128x128xbf16>
    %cst_16 = arith.constant dense<0.000000e+00> : vector<8x128xf32>
    %16 = tpu.matmul %14, %15, %cst_16 {dimension_numbers = #tpu.dot_dimension_numbers<[1], [0], [0], [1], [0, 0, 1, 1], [], []>} : vector<8x128xbf16>, vector<128x128xbf16>, vector<8x128xf32> -> vector<8x128xf32>
    %17 = arith.addf %13, %16 : vector<8x128xf32>
    %18 = math.tanh %17 : vector<8x128xf32>
    %19 = vector.broadcast %c0_i32 : i32 to vector<8x1xi32>
    %20 = arith.cmpi sgt, %9, %19 : vector<8x1xi32>
    %cst_17 = arith.constant 0.000000e+00 : f32
    %21 = vector.shape_cast %20 : vector<8x1xi1> to vector<8x1xi1>
    %22 = vector.broadcast %21 : vector<8x1xi1> to vector<8x128xi1>
    %23 = vector.broadcast %cst_17 : f32 to vector<8x128xf32>
    %24 = arith.select %22, %18, %23 : vector<8x128xi1>, vector<8x128xf32>
    %25 = arith.truncf %24 : vector<8x128xf32> to vector<8x128xbf16>
    %26 = arith.index_cast %c0_i32 : i32 to index
    %c0_18 = arith.constant 0 : index
    %c0_19 = arith.constant 0 : index
    %27 = vector.load %arg6[%26, %c0_18, %c0_19] : memref<8x8x128xbf16, #tpu.memory_space<vmem>>, vector<1x8x128xbf16>
    %28 = vector.shape_cast %27 : vector<1x8x128xbf16> to vector<8x128xbf16>
    %29 = vector.shape_cast %25 : vector<8x128xbf16> to vector<1x8x128xbf16>
    tpu.vector_store %arg6[%26, %c0_18, %c0_19], %29 {strides = array<i32>} : memref<8x8x128xbf16, #tpu.memory_space<vmem>>, vector<1x8x128xbf16>,
    %c1_i32 = arith.constant 1 : i32
    %30 = arith.index_cast %c1_i32 : i32 to index
    %c0_20 = arith.constant 0 : index
    %c0_21 = arith.constant 0 : index
    %31 = vector.load %arg7[%30, %c0_20, %c0_21] : memref<8x8x128xf32, #tpu.memory_space<vmem>>, vector<1x8x128xf32>
    %32 = vector.shape_cast %31 : vector<1x8x128xf32> to vector<8x128xf32>
    %33 = arith.truncf %18 : vector<8x128xf32> to vector<8x128xbf16>
    %c0_22 = arith.constant 0 : index
    %c0_23 = arith.constant 0 : index
    %34 = vector.load %arg4[%c0_22, %c0_23] : memref<128x128xbf16, #tpu.memory_space<vmem>>, vector<128x128xbf16>
    %cst_24 = arith.constant dense<0.000000e+00> : vector<8x128xf32>
    %35 = tpu.matmul %33, %34, %cst_24 {dimension_numbers = #tpu.dot_dimension_numbers<[1], [0], [0], [1], [0, 0, 1, 1], [], []>} : vector<8x128xbf16>, vector<128x128xbf16>, vector<8x128xf32> -> vector<8x128xf32>
    %36 = arith.addf %32, %35 : vector<8x128xf32>
    %37 = math.tanh %36 : vector<8x128xf32>
    %38 = vector.broadcast %c1_i32 : i32 to vector<8x1xi32>
    %39 = arith.cmpi sgt, %9, %38 : vector<8x1xi32>
    %cst_25 = arith.constant 0.000000e+00 : f32
    %40 = vector.shape_cast %39 : vector<8x1xi1> to vector<8x1xi1>
    %41 = vector.broadcast %40 : vector<8x1xi1> to vector<8x128xi1>
    %42 = vector.broadcast %cst_25 : f32 to vector<8x128xf32>
    %43 = arith.select %41, %37, %42 : vector<8x128xi1>, vector<8x128xf32>
    %44 = arith.truncf %43 : vector<8x128xf32> to vector<8x128xbf16>
    %45 = arith.index_cast %c1_i32 : i32 to index
    %c0_26 = arith.constant 0 : index
    %c0_27 = arith.constant 0 : index
    %46 = vector.load %arg6[%45, %c0_26, %c0_27] : memref<8x8x128xbf16, #tpu.memory_space<vmem>>, vector<1x8x128xbf16>
    %47 = vector.shape_cast %46 : vector<1x8x128xbf16> to vector<8x128xbf16>
    %48 = vector.shape_cast %44 : vector<8x128xbf16> to vector<1x8x128xbf16>
    tpu.vector_store %arg6[%45, %c0_26, %c0_27], %48 {strides = array<i32>} : memref<8x8x128xbf16, #tpu.memory_space<vmem>>, vector<1x8x128xbf16>,
    %c2_i32 = arith.constant 2 : i32
    %49 = arith.index_cast %c2_i32 : i32 to index
    %c0_28 = arith.constant 0 : index
    %c0_29 = arith.constant 0 : index
    %50 = vector.load %arg7[%49, %c0_28, %c0_29] : memref<8x8x128xf32, #tpu.memory_space<vmem>>, vector<1x8x128xf32>
    %51 = vector.shape_cast %50 : vector<1x8x128xf32> to vector<8x128xf32>
    %52 = arith.truncf %37 : vector<8x128xf32> to vector<8x128xbf16>
    %c0_30 = arith.constant 0 : index
    %c0_31 = arith.constant 0 : index
    %53 = vector.load %arg4[%c0_30, %c0_31] : memref<128x128xbf16, #tpu.memory_space<vmem>>, vector<128x128xbf16>
    %cst_32 = arith.constant dense<0.000000e+00> : vector<8x128xf32>
    %54 = tpu.matmul %52, %53, %cst_32 {dimension_numbers = #tpu.dot_dimension_numbers<[1], [0], [0], [1], [0, 0, 1, 1], [], []>} : vector<8x128xbf16>, vector<128x128xbf16>, vector<8x128xf32> -> vector<8x128xf32>
    %55 = arith.addf %51, %54 : vector<8x128xf32>
    %56 = math.tanh %55 : vector<8x128xf32>
    %57 = vector.broadcast %c2_i32 : i32 to vector<8x1xi32>
    %58 = arith.cmpi sgt, %9, %57 : vector<8x1xi32>
    %cst_33 = arith.constant 0.000000e+00 : f32
    %59 = vector.shape_cast %58 : vector<8x1xi1> to vector<8x1xi1>
    %60 = vector.broadcast %59 : vector<8x1xi1> to vector<8x128xi1>
    %61 = vector.broadcast %cst_33 : f32 to vector<8x128xf32>
    %62 = arith.select %60, %56, %61 : vector<8x128xi1>, vector<8x128xf32>
    %63 = arith.truncf %62 : vector<8x128xf32> to vector<8x128xbf16>
    %64 = arith.index_cast %c2_i32 : i32 to index
    %c0_34 = arith.constant 0 : index
    %c0_35 = arith.constant 0 : index
    %65 = vector.load %arg6[%64, %c0_34, %c0_35] : memref<8x8x128xbf16, #tpu.memory_space<vmem>>, vector<1x8x128xbf16>
    %66 = vector.shape_cast %65 : vector<1x8x128xbf16> to vector<8x128xbf16>
    %67 = vector.shape_cast %63 : vector<8x128xbf16> to vector<1x8x128xbf16>
    tpu.vector_store %arg6[%64, %c0_34, %c0_35], %67 {strides = array<i32>} : memref<8x8x128xbf16, #tpu.memory_space<vmem>>, vector<1x8x128xbf16>,
    %c3_i32 = arith.constant 3 : i32
    %68 = arith.index_cast %c3_i32 : i32 to index
    %c0_36 = arith.constant 0 : index
    %c0_37 = arith.constant 0 : index
    %69 = vector.load %arg7[%68, %c0_36, %c0_37] : memref<8x8x128xf32, #tpu.memory_space<vmem>>, vector<1x8x128xf32>
    %70 = vector.shape_cast %69 : vector<1x8x128xf32> to vector<8x128xf32>
    %71 = arith.truncf %56 : vector<8x128xf32> to vector<8x128xbf16>
    %c0_38 = arith.constant 0 : index
    %c0_39 = arith.constant 0 : index
    %72 = vector.load %arg4[%c0_38, %c0_39] : memref<128x128xbf16, #tpu.memory_space<vmem>>, vector<128x128xbf16>
    %cst_40 = arith.constant dense<0.000000e+00> : vector<8x128xf32>
    %73 = tpu.matmul %71, %72, %cst_40 {dimension_numbers = #tpu.dot_dimension_numbers<[1], [0], [0], [1], [0, 0, 1, 1], [], []>} : vector<8x128xbf16>, vector<128x128xbf16>, vector<8x128xf32> -> vector<8x128xf32>
    %74 = arith.addf %70, %73 : vector<8x128xf32>
    %75 = math.tanh %74 : vector<8x128xf32>
    %76 = vector.broadcast %c3_i32 : i32 to vector<8x1xi32>
    %77 = arith.cmpi sgt, %9, %76 : vector<8x1xi32>
    %cst_41 = arith.constant 0.000000e+00 : f32
    %78 = vector.shape_cast %77 : vector<8x1xi1> to vector<8x1xi1>
    %79 = vector.broadcast %78 : vector<8x1xi1> to vector<8x128xi1>
    %80 = vector.broadcast %cst_41 : f32 to vector<8x128xf32>
    %81 = arith.select %79, %75, %80 : vector<8x128xi1>, vector<8x128xf32>
    %82 = arith.truncf %81 : vector<8x128xf32> to vector<8x128xbf16>
    %83 = arith.index_cast %c3_i32 : i32 to index
    %c0_42 = arith.constant 0 : index
    %c0_43 = arith.constant 0 : index
    %84 = vector.load %arg6[%83, %c0_42, %c0_43] : memref<8x8x128xbf16, #tpu.memory_space<vmem>>, vector<1x8x128xbf16>
    %85 = vector.shape_cast %84 : vector<1x8x128xbf16> to vector<8x128xbf16>
    %86 = vector.shape_cast %82 : vector<8x128xbf16> to vector<1x8x128xbf16>
    tpu.vector_store %arg6[%83, %c0_42, %c0_43], %86 {strides = array<i32>} : memref<8x8x128xbf16, #tpu.memory_space<vmem>>, vector<1x8x128xbf16>,
    %c4_i32 = arith.constant 4 : i32
    %87 = arith.index_cast %c4_i32 : i32 to index
    %c0_44 = arith.constant 0 : index
    %c0_45 = arith.constant 0 : index
    %88 = vector.load %arg7[%87, %c0_44, %c0_45] : memref<8x8x128xf32, #tpu.memory_space<vmem>>, vector<1x8x128xf32>
    %89 = vector.shape_cast %88 : vector<1x8x128xf32> to vector<8x128xf32>
    %90 = arith.truncf %75 : vector<8x128xf32> to vector<8x128xbf16>
    %c0_46 = arith.constant 0 : index
    %c0_47 = arith.constant 0 : index
    %91 = vector.load %arg4[%c0_46, %c0_47] : memref<128x128xbf16, #tpu.memory_space<vmem>>, vector<128x128xbf16>
    %cst_48 = arith.constant dense<0.000000e+00> : vector<8x128xf32>
    %92 = tpu.matmul %90, %91, %cst_48 {dimension_numbers = #tpu.dot_dimension_numbers<[1], [0], [0], [1], [0, 0, 1, 1], [], []>} : vector<8x128xbf16>, vector<128x128xbf16>, vector<8x128xf32> -> vector<8x128xf32>
    %93 = arith.addf %89, %92 : vector<8x128xf32>
    %94 = math.tanh %93 : vector<8x128xf32>
    %95 = vector.broadcast %c4_i32 : i32 to vector<8x1xi32>
    %96 = arith.cmpi sgt, %9, %95 : vector<8x1xi32>
    %cst_49 = arith.constant 0.000000e+00 : f32
    %97 = vector.shape_cast %96 : vector<8x1xi1> to vector<8x1xi1>
    %98 = vector.broadcast %97 : vector<8x1xi1> to vector<8x128xi1>
    %99 = vector.broadcast %cst_49 : f32 to vector<8x128xf32>
    %100 = arith.select %98, %94, %99 : vector<8x128xi1>, vector<8x128xf32>
    %101 = arith.truncf %100 : vector<8x128xf32> to vector<8x128xbf16>
    %102 = arith.index_cast %c4_i32 : i32 to index
    %c0_50 = arith.constant 0 : index
    %c0_51 = arith.constant 0 : index
    %103 = vector.load %arg6[%102, %c0_50, %c0_51] : memref<8x8x128xbf16, #tpu.memory_space<vmem>>, vector<1x8x128xbf16>
    %104 = vector.shape_cast %103 : vector<1x8x128xbf16> to vector<8x128xbf16>
    %105 = vector.shape_cast %101 : vector<8x128xbf16> to vector<1x8x128xbf16>
    tpu.vector_store %arg6[%102, %c0_50, %c0_51], %105 {strides = array<i32>} : memref<8x8x128xbf16, #tpu.memory_space<vmem>>, vector<1x8x128xbf16>,
    %c5_i32 = arith.constant 5 : i32
    %106 = arith.index_cast %c5_i32 : i32 to index
    %c0_52 = arith.constant 0 : index
    %c0_53 = arith.constant 0 : index
    %107 = vector.load %arg7[%106, %c0_52, %c0_53] : memref<8x8x128xf32, #tpu.memory_space<vmem>>, vector<1x8x128xf32>
    %108 = vector.shape_cast %107 : vector<1x8x128xf32> to vector<8x128xf32>
    %109 = arith.truncf %94 : vector<8x128xf32> to vector<8x128xbf16>
    %c0_54 = arith.constant 0 : index
    %c0_55 = arith.constant 0 : index
    %110 = vector.load %arg4[%c0_54, %c0_55] : memref<128x128xbf16, #tpu.memory_space<vmem>>, vector<128x128xbf16>
    %cst_56 = arith.constant dense<0.000000e+00> : vector<8x128xf32>
    %111 = tpu.matmul %109, %110, %cst_56 {dimension_numbers = #tpu.dot_dimension_numbers<[1], [0], [0], [1], [0, 0, 1, 1], [], []>} : vector<8x128xbf16>, vector<128x128xbf16>, vector<8x128xf32> -> vector<8x128xf32>
    %112 = arith.addf %108, %111 : vector<8x128xf32>
    %113 = math.tanh %112 : vector<8x128xf32>
    %114 = vector.broadcast %c5_i32 : i32 to vector<8x1xi32>
    %115 = arith.cmpi sgt, %9, %114 : vector<8x1xi32>
    %cst_57 = arith.constant 0.000000e+00 : f32
    %116 = vector.shape_cast %115 : vector<8x1xi1> to vector<8x1xi1>
    %117 = vector.broadcast %116 : vector<8x1xi1> to vector<8x128xi1>
    %118 = vector.broadcast %cst_57 : f32 to vector<8x128xf32>
    %119 = arith.select %117, %113, %118 : vector<8x128xi1>, vector<8x128xf32>
    %120 = arith.truncf %119 : vector<8x128xf32> to vector<8x128xbf16>
    %121 = arith.index_cast %c5_i32 : i32 to index
    %c0_58 = arith.constant 0 : index
    %c0_59 = arith.constant 0 : index
    %122 = vector.load %arg6[%121, %c0_58, %c0_59] : memref<8x8x128xbf16, #tpu.memory_space<vmem>>, vector<1x8x128xbf16>
    %123 = vector.shape_cast %122 : vector<1x8x128xbf16> to vector<8x128xbf16>
    %124 = vector.shape_cast %120 : vector<8x128xbf16> to vector<1x8x128xbf16>
    tpu.vector_store %arg6[%121, %c0_58, %c0_59], %124 {strides = array<i32>} : memref<8x8x128xbf16, #tpu.memory_space<vmem>>, vector<1x8x128xbf16>,
    %c6_i32 = arith.constant 6 : i32
    %125 = arith.index_cast %c6_i32 : i32 to index
    %c0_60 = arith.constant 0 : index
    %c0_61 = arith.constant 0 : index
    %126 = vector.load %arg7[%125, %c0_60, %c0_61] : memref<8x8x128xf32, #tpu.memory_space<vmem>>, vector<1x8x128xf32>
    %127 = vector.shape_cast %126 : vector<1x8x128xf32> to vector<8x128xf32>
    %128 = arith.truncf %113 : vector<8x128xf32> to vector<8x128xbf16>
    %c0_62 = arith.constant 0 : index
    %c0_63 = arith.constant 0 : index
    %129 = vector.load %arg4[%c0_62, %c0_63] : memref<128x128xbf16, #tpu.memory_space<vmem>>, vector<128x128xbf16>
    %cst_64 = arith.constant dense<0.000000e+00> : vector<8x128xf32>
    %130 = tpu.matmul %128, %129, %cst_64 {dimension_numbers = #tpu.dot_dimension_numbers<[1], [0], [0], [1], [0, 0, 1, 1], [], []>} : vector<8x128xbf16>, vector<128x128xbf16>, vector<8x128xf32> -> vector<8x128xf32>
    %131 = arith.addf %127, %130 : vector<8x128xf32>
    %132 = math.tanh %131 : vector<8x128xf32>
    %133 = vector.broadcast %c6_i32 : i32 to vector<8x1xi32>
    %134 = arith.cmpi sgt, %9, %133 : vector<8x1xi32>
    %cst_65 = arith.constant 0.000000e+00 : f32
    %135 = vector.shape_cast %134 : vector<8x1xi1> to vector<8x1xi1>
    %136 = vector.broadcast %135 : vector<8x1xi1> to vector<8x128xi1>
    %137 = vector.broadcast %cst_65 : f32 to vector<8x128xf32>
    %138 = arith.select %136, %132, %137 : vector<8x128xi1>, vector<8x128xf32>
    %139 = arith.truncf %138 : vector<8x128xf32> to vector<8x128xbf16>
    %140 = arith.index_cast %c6_i32 : i32 to index
    %c0_66 = arith.constant 0 : index
    %c0_67 = arith.constant 0 : index
    %141 = vector.load %arg6[%140, %c0_66, %c0_67] : memref<8x8x128xbf16, #tpu.memory_space<vmem>>, vector<1x8x128xbf16>
    %142 = vector.shape_cast %141 : vector<1x8x128xbf16> to vector<8x128xbf16>
    %143 = vector.shape_cast %139 : vector<8x128xbf16> to vector<1x8x128xbf16>
    tpu.vector_store %arg6[%140, %c0_66, %c0_67], %143 {strides = array<i32>} : memref<8x8x128xbf16, #tpu.memory_space<vmem>>, vector<1x8x128xbf16>,
    %c7_i32 = arith.constant 7 : i32
    %144 = arith.index_cast %c7_i32 : i32 to index
    %c0_68 = arith.constant 0 : index
    %c0_69 = arith.constant 0 : index
    %145 = vector.load %arg7[%144, %c0_68, %c0_69] : memref<8x8x128xf32, #tpu.memory_space<vmem>>, vector<1x8x128xf32>
    %146 = vector.shape_cast %145 : vector<1x8x128xf32> to vector<8x128xf32>
    %147 = arith.truncf %132 : vector<8x128xf32> to vector<8x128xbf16>
    %c0_70 = arith.constant 0 : index
    %c0_71 = arith.constant 0 : index
    %148 = vector.load %arg4[%c0_70, %c0_71] : memref<128x128xbf16, #tpu.memory_space<vmem>>, vector<128x128xbf16>
    %cst_72 = arith.constant dense<0.000000e+00> : vector<8x128xf32>
    %149 = tpu.matmul %147, %148, %cst_72 {dimension_numbers = #tpu.dot_dimension_numbers<[1], [0], [0], [1], [0, 0, 1, 1], [], []>} : vector<8x128xbf16>, vector<128x128xbf16>, vector<8x128xf32> -> vector<8x128xf32>
    %150 = arith.addf %146, %149 : vector<8x128xf32>
    %151 = math.tanh %150 : vector<8x128xf32>
    %152 = vector.broadcast %c7_i32 : i32 to vector<8x1xi32>
    %153 = arith.cmpi sgt, %9, %152 : vector<8x1xi32>
    %cst_73 = arith.constant 0.000000e+00 : f32
    %154 = vector.shape_cast %153 : vector<8x1xi1> to vector<8x1xi1>
    %155 = vector.broadcast %154 : vector<8x1xi1> to vector<8x128xi1>
    %156 = vector.broadcast %cst_73 : f32 to vector<8x128xf32>
    %157 = arith.select %155, %151, %156 : vector<8x128xi1>, vector<8x128xf32>
    %158 = arith.truncf %157 : vector<8x128xf32> to vector<8x128xbf16>
    %159 = arith.index_cast %c7_i32 : i32 to index
    %c0_74 = arith.constant 0 : index
    %c0_75 = arith.constant 0 : index
    %160 = vector.load %arg6[%159, %c0_74, %c0_75] : memref<8x8x128xbf16, #tpu.memory_space<vmem>>, vector<1x8x128xbf16>
    %161 = vector.shape_cast %160 : vector<1x8x128xbf16> to vector<8x128xbf16>
    %162 = vector.shape_cast %158 : vector<8x128xbf16> to vector<1x8x128xbf16>
    tpu.vector_store %arg6[%159, %c0_74, %c0_75], %162 {strides = array<i32>} : memref<8x8x128xbf16, #tpu.memory_space<vmem>>, vector<1x8x128xbf16>,
    %c8_i32 = arith.constant 8 : i32
    return
  }
  func.func @transform_0(%arg0: i32) -> (i32, i32, i32) {
    %c0_i32 = arith.constant 0 : i32
    %c0_i32_0 = arith.constant 0 : i32
    %c0_i32_1 = arith.constant 0 : i32
    return %c0_i32, %arg0, %c0_i32_0 : i32, i32, i32
  }
  func.func @transform_1(%arg0: i32) -> (i32, i32) {
    %c0_i32 = arith.constant 0 : i32
    %c0_i32_0 = arith.constant 0 : i32
    return %arg0, %c0_i32 : i32, i32
  }
  func.func @transform_2(%arg0: i32) -> (i32, i32) {
    %c0_i32 = arith.constant 0 : i32
    %c0_i32_0 = arith.constant 0 : i32
    %c0_i32_1 = arith.constant 0 : i32
    return %c0_i32, %c0_i32_0 : i32, i32
  }
  func.func @transform_3(%arg0: i32) -> (i32, i32) {
    %c0_i32 = arith.constant 0 : i32
    %c0_i32_0 = arith.constant 0 : i32
    %c0_i32_1 = arith.constant 0 : i32
    return %c0_i32, %c0_i32_0 : i32, i32
  }
  func.func @transform_4(%arg0: i32) -> (i32, i32) {
    %c0_i32 = arith.constant 0 : i32
    %c0_i32_0 = arith.constant 0 : i32
    %c0_i32_1 = arith.constant 0 : i32
    return %c0_i32, %c0_i32_0 : i32, i32
  }
  func.func @transform_5(%arg0: i32) -> (i32, i32, i32) {
    %c0_i32 = arith.constant 0 : i32
    %c0_i32_0 = arith.constant 0 : i32
    %c0_i32_1 = arith.constant 0 : i32
    return %c0_i32, %arg0, %c0_i32_0 : i32, i32, i32
  }
}

module attributes {stable_mosaic.version = 11 : i64} {
  func.func @_proj_resident_kernel(%arg0: i32, %arg1: i32, %arg2: memref<64x128xbf16, #tpu.memory_space<vmem>>, %arg3: memref<128x256xbf16, #tpu.memory_space<vmem>>, %arg4: memref<1x256xf32, #tpu.memory_space<vmem>>, %arg5: memref<64x256xf32, #tpu.memory_space<vmem>>) attributes {dimension_semantics = [#tpu.dimension_semantics<parallel>, #tpu.dimension_semantics<parallel>], iteration_bounds = array<i64: 1, 1>, scalar_prefetch = 0 : i64, scratch_operands = 0 : i64, tpu.core_type = #tpu.core_type<tc>, window_params = [{pipeline_mode = #tpu.pipeline_mode<synchronous>, transform_indices = @transform_0, window_bounds = array<i64: 64, 128>}, {transform_indices = @transform_1, window_bounds = array<i64: 128, 256>}, {transform_indices = @transform_2, window_bounds = array<i64: 1, 256>}, {transform_indices = @transform_3, window_bounds = array<i64: 64, 256>}]} {
    %c64_i32 = arith.constant 64 : i32
    %0 = arith.muli %arg1, %c64_i32 : i32
    %1 = tpu.assume_multiple %0, 64 : i32
    %2 = arith.index_cast %1 : i32 to index
    %c0 = arith.constant 0 : index
    %3 = vector.load %arg2[%2, %c0] : memref<64x128xbf16, #tpu.memory_space<vmem>>, vector<64x128xbf16>
    %c0_0 = arith.constant 0 : index
    %c0_1 = arith.constant 0 : index
    %4 = vector.load %arg3[%c0_0, %c0_1] : memref<128x256xbf16, #tpu.memory_space<vmem>>, vector<128x256xbf16>
    %cst = arith.constant dense<0.000000e+00> : vector<64x256xf32>
    %5 = tpu.matmul %3, %4, %cst {dimension_numbers = #tpu.dot_dimension_numbers<[1], [0], [0], [1], [0, 0, 1, 1], [], []>} : vector<64x128xbf16>, vector<128x256xbf16>, vector<64x256xf32> -> vector<64x256xf32>
    %c0_2 = arith.constant 0 : index
    %c0_3 = arith.constant 0 : index
    %6 = vector.load %arg4[%c0_2, %c0_3] : memref<1x256xf32, #tpu.memory_space<vmem>>, vector<1x256xf32>
    %7 = vector.broadcast %6 : vector<1x256xf32> to vector<64x256xf32>
    %8 = arith.addf %5, %7 : vector<64x256xf32>
    %c0_4 = arith.constant 0 : index
    %c0_5 = arith.constant 0 : index
    %9 = vector.load %arg5[%c0_4, %c0_5] : memref<64x256xf32, #tpu.memory_space<vmem>>, vector<64x256xf32>
    tpu.vector_store %arg5[%c0_4, %c0_5], %8 {strides = array<i32>} : memref<64x256xf32, #tpu.memory_space<vmem>>, vector<64x256xf32>,
    return
  }
  func.func @transform_0(%arg0: i32, %arg1: i32) -> (i32, i32) {
    %c0_i32 = arith.constant 0 : i32
    %c0_i32_0 = arith.constant 0 : i32
    %c0_i32_1 = arith.constant 0 : i32
    return %c0_i32, %c0_i32_0 : i32, i32
  }
  func.func @transform_1(%arg0: i32, %arg1: i32) -> (i32, i32) {
    %c0_i32 = arith.constant 0 : i32
    %c0_i32_0 = arith.constant 0 : i32
    return %c0_i32, %arg0 : i32, i32
  }
  func.func @transform_2(%arg0: i32, %arg1: i32) -> (i32, i32) {
    %c0_i32 = arith.constant 0 : i32
    %c0_i32_0 = arith.constant 0 : i32
    return %c0_i32, %arg0 : i32, i32
  }
  func.func @transform_3(%arg0: i32, %arg1: i32) -> (i32, i32) {
    %c0_i32 = arith.constant 0 : i32
    return %arg1, %arg0 : i32, i32
  }
}

</mosaic_0001>

<bundles_post_ra>
// kernel: language_model_forward.3
= control target key start
LH: loop header
LB: loop body
LE: loop exit
PB: predicated region body
PF: predicated region fallthrough
CT: control target
= control target key end

     0   :  { %s528_s1 = inlined_call_operand.vmem [shape: bf16[128,256], index: 1, kind: input, shape index: {}]   ;;  %s529_s0 = inlined_call_operand.vmem [shape: bf16[64,128], index: 0, kind: input, shape index: {}]   ;;  %s530_s2 = inlined_call_operand.vmem [shape: f32[1,256], index: 2, kind: input, shape index: {}]   ;;  %s531_s3 = inlined_call_operand.vmem [shape: f32[64,256], index: 3, kind: output, shape index: {}]  }
   0x1   :  { %v307_v0 = vld [vmem:[%s528_s1 + $0x70] sm:$0xf]  ;;  %v332_v1 = vld [vmem:[%s528_s1 + $0x74] sm:$0xf0]  ;;  %v331_v2 = vld [vmem:[%s528_s1 + $0x74] sm:$0xf] }
   0x2   :  { %v308_v3 = vor.u32 %v332_v1, %v307_v0  ;;  %v309_v4 = vld [vmem:[%s528_s1 + $0x78] sm:$0xf0]  ;;  %v299_v5 = vld [vmem:[%s528_s1 + $0x60] sm:$0xf]  ;;  %v330_v6 = vld [vmem:[%s528_s1 + $0x64] sm:$0xf0] }
   0x3   :  { %v312_v7 = vor.u32 %v331_v2, %v309_v4  ;;  %v329_v8 = vld [vmem:[%s528_s1 + $0x64] sm:$0xf]  ;;  %v301_v9 = vld [vmem:[%s528_s1 + $0x68] sm:$0xf0]  ;;  %v300_v10 = vor.u32 %v330_v6, %v299_v5  ;;  %v291_v12 = vld [vmem:[%s528_s1 + $0x50] sm:$0xf] }
   0x4   :  { %153 = vmatpush.bf16.msra.mxu0 %v308_v3  ;;  %333 = vmatpush.bf16.msra.mxu2 %v308_v3  ;;  %v304_v11 = vor.u32 %v329_v8, %v301_v9  ;;  %v328_v13 = vld [vmem:[%s528_s1 + $0x54] sm:$0xf0]  ;;  %v327_v14 = vld [vmem:[%s528_s1 + $0x54] sm:$0xf]  ;;  %v293_v15 = vld [vmem:[%s528_s1 + $0x58] sm:$0xf0] }
   0x5   :  { %182 = vmatpush.bf16.msra.mxu1 %v312_v7  ;;  %341 = vmatpush.bf16.msra.mxu3 %v312_v7  ;;  %v292_v16 = vor.u32 %v328_v13, %v291_v12  ;;  %v296_v17 = vor.u32 %v327_v14, %v293_v15  ;;  %v283_v18 = vld [vmem:[%s528_s1 + $0x40] sm:$0xf]  ;;  %v326_v19 = vld [vmem:[%s528_s1 + $0x44] sm:$0xf0]  ;;  %v325_v20 = vld [vmem:[%s528_s1 + $0x44] sm:$0xf] }
   0x6   :  { %v285_v21 = vld [vmem:[%s528_s1 + $0x48] sm:$0xf0]  ;;  %v284_v22 = vor.u32 %v326_v19, %v283_v18  ;;  %v275_v24 = vld [vmem:[%s528_s1 + $0x30] sm:$0xf]  ;;  %v324_v25 = vld [vmem:[%s528_s1 + $0x34] sm:$0xf0] }
   0x7   :  { %v288_v23 = vor.u32 %v325_v20, %v285_v21  ;;  %v323_v26 = vld [vmem:[%s528_s1 + $0x34] sm:$0xf]  ;;  %v277_v27 = vld [vmem:[%s528_s1 + $0x38] sm:$0xf0]  ;;  %v276_v28 = vor.u32 %v324_v25, %v275_v24  ;;  %v267_v30 = vld [vmem:[%s528_s1 + $0x20] sm:$0xf] }
   0x8   :  { %154 = vmatpush.bf16.msra.mxu0 %v300_v10  ;;  %334 = vmatpush.bf16.msra.mxu2 %v300_v10  ;;  %v280_v29 = vor.u32 %v323_v26, %v277_v27  ;;  %v322_v31 = vld [vmem:[%s528_s1 + $0x24] sm:$0xf0]  ;;  %v321_v32 = vld [vmem:[%s528_s1 + $0x24] sm:$0xf]  ;;  %v269_v33 = vld [vmem:[%s528_s1 + $0x28] sm:$0xf0] }
   0x9   :  { %183 = vmatpush.bf16.msra.mxu1 %v304_v11  ;;  %342 = vmatpush.bf16.msra.mxu3 %v304_v11  ;;  %v268_v34 = vor.u32 %v322_v31, %v267_v30  ;;  %v272_v35 = vor.u32 %v321_v32, %v269_v33  ;;  %v259_v36 = vld [vmem:[%s528_s1 + $0x10] sm:$0xf]  ;;  %v320_v37 = vld [vmem:[%s528_s1 + $0x14] sm:$0xf0]  ;;  %v319_v38 = vld [vmem:[%s528_s1 + $0x14] sm:$0xf] }
   0xa   :  { %v261_v39 = vld [vmem:[%s528_s1 + $0x18] sm:$0xf0]  ;;  %v260_v40 = vor.u32 %v320_v37, %v259_v36  ;;  %v251_v42 = vld [vmem:[%s528_s1] sm:$0xf]  ;;  %v318_v43 = vld [vmem:[%s528_s1 + $0x4] sm:$0xf0] }
   0xb   :  { %v264_v41 = vor.u32 %v319_v38, %v261_v39  ;;  %v317_v44 = vld [vmem:[%s528_s1 + $0x4] sm:$0xf]  ;;  %v253_v45 = vld [vmem:[%s528_s1 + $0x8] sm:$0xf0]  ;;  %v252_v46 = vor.u32 %v318_v43, %v251_v42  ;;  %v315_v49 = vld [vmem:[%s529_s0 + $0x10] sm:$0xff] }
   0xc   :  { %155 = vmatpush.bf16.msra.mxu0 %v292_v16  ;;  %335 = vmatpush.bf16.msra.mxu2 %v292_v16  ;;  %v256_v47 = vor.u32 %v317_v44, %v253_v45  ;;  %v313_v48 = vld [vmem:[%s529_s0] sm:$0xff]  ;;  %v314_v50 = vld [vmem:[%s529_s0 + $0x8] sm:$0xff]  ;;  %v316_v51 = vld [vmem:[%s529_s0 + $0x18] sm:$0xff] }
   0xd   :  { %184 = vmatpush.bf16.msra.mxu1 %v296_v17  ;;  %343 = vmatpush.bf16.msra.mxu3 %v296_v17  ;;  %v43_v52 = vld [vmem:[%s530_s2] sm:$0x3] }
   0xe   :  { %v45_v53 = vperm.slane %v43_v52, 0  ;;  %v46_v54 = vperm.slane %v43_v52, 1 }
  0x10   :  { %156 = vmatpush.bf16.msra.mxu0 %v284_v22  ;;  %336 = vmatpush.bf16.msra.mxu2 %v284_v22 }
  0x11   :  { %185 = vmatpush.bf16.msra.mxu1 %v288_v23  ;;  %344 = vmatpush.bf16.msra.mxu3 %v288_v23 }
  0x14   :  { %157 = vmatpush.bf16.msra.mxu0 %v276_v28  ;;  %337 = vmatpush.bf16.msra.mxu2 %v276_v28 }
  0x15   :  { %186 = vmatpush.bf16.msra.mxu1 %v280_v29  ;;  %345 = vmatpush.bf16.msra.mxu3 %v280_v29 }
  0x18   :  { %158 = vmatpush.bf16.msra.mxu0 %v268_v34  ;;  %338 = vmatpush.bf16.msra.mxu2 %v268_v34 }
  0x19   :  { %187 = vmatpush.bf16.msra.mxu1 %v272_v35  ;;  %346 = vmatpush.bf16.msra.mxu3 %v272_v35 }
  0x1c   :  { %159 = vmatpush.bf16.msra.mxu0 %v260_v40  ;;  %339 = vmatpush.bf16.msra.mxu2 %v260_v40 }
  0x1d   :  { %188 = vmatpush.bf16.msra.mxu1 %v264_v41  ;;  %347 = vmatpush.bf16.msra.mxu3 %v264_v41 }
  0x20   :  { %160 = vmatpush.bf16.msra.mxu0 %v252_v46  ;;  %340 = vmatpush.bf16.msra.mxu2 %v252_v46 }
  0x21   :  { %189 = vmatpush.bf16.msra.mxu1 %v256_v47  ;;  %348 = vmatpush.bf16.msra.mxu3 %v256_v47 }
  0x23   :  { %161 = vmatmul.bf16.vlgmr.msra.gmra.mxu0 %v313_v48  ;;  %171 = vmatmul.bf16.vlgmr.msra.gmra.mxu2 %v315_v49 }
  0x24   :  { %190 = vmatmul.bf16.vlgmr.msra.gmra.mxu1 %v313_v48  ;;  %200 = vmatmul.bf16.vlgmr.msra.gmra.mxu3 %v315_v49 }
  0x33   :  { %166 = vmatmul.bf16.gmra.mxu0 %v314_v50  ;;  %176 = vmatmul.bf16.gmra.mxu2 %v316_v51 }
  0x34   :  { %195 = vmatmul.bf16.gmra.mxu1 %v314_v50  ;;  %205 = vmatmul.bf16.gmra.mxu3 %v316_v51 }
  0xa0   :  { %v162_v55 = vpop.f32.mrf.mxu0 }
  0xa1   :  { %v163_v56 = vadd.f32 %v162_v55, %v45_v53  ;;  %v191_v57 = vpop.f32.mrf.mxu1 }
  0xa2   :  { %v192_v58 = vadd.f32 %v191_v57, %v46_v54 }
  0xa3   :  { %211 = vst [vmem:[%s531_s3] sm:$0xff] %v163_v56 }
  0xa4   :  { %212 = vst [vmem:[%s531_s3 + $0x8] sm:$0xff] %v192_v58 }
  0xa6   :  { %v172_v59 = vpop.f32.mrf.mxu2 }
  0xa7   :  { %v173_v60 = vadd.f32 %v172_v59, %v45_v53  ;;  %v201_v61 = vpop.f32.mrf.mxu3 }
  0xa8   :  { %v202_v62 = vadd.f32 %v201_v61, %v46_v54  ;;  %v164_v63 = vpop.f32.mrf.mxu0 }
  0xa9   :  { %219 = vst [vmem:[%s531_s3 + $0x40] sm:$0xff] %v173_v60  ;;  %v165_v0 = vadd.f32 %v164_v63, %v45_v53  ;;  %v193_v1 = vpop.f32.mrf.mxu1 }
  0xaa   :  { %220 = vst [vmem:[%s531_s3 + $0x48] sm:$0xff] %v202_v62  ;;  %v194_v2 = vadd.f32 %v193_v1, %v46_v54 }
  0xab   :  { %213 = vst [vmem:[%s531_s3 + $0x10] sm:$0xff] %v165_v0 }
  0xac   :  { %214 = vst [vmem:[%s531_s3 + $0x18] sm:$0xff] %v194_v2 }
  0xae   :  { %v174_v3 = vpop.f32.mrf.mxu2 }
  0xaf   :  { %v175_v4 = vadd.f32 %v174_v3, %v45_v53  ;;  %v203_v5 = vpop.f32.mrf.mxu3 }
  0xb0   :  { %v204_v6 = vadd.f32 %v203_v5, %v46_v54  ;;  %v167_v7 = vpop.f32.mrf.mxu0 }
  0xb1   :  { %221 = vst [vmem:[%s531_s3 + $0x50] sm:$0xff] %v175_v4  ;;  %v168_v8 = vadd.f32 %v167_v7, %v45_v53  ;;  %v196_v9 = vpop.f32.mrf.mxu1 }
  0xb2   :  { %222 = vst [vmem:[%s531_s3 + $0x58] sm:$0xff] %v204_v6  ;;  %v197_v10 = vadd.f32 %v196_v9, %v46_v54 }
  0xb3   :  { %215 = vst [vmem:[%s531_s3 + $0x20] sm:$0xff] %v168_v8 }
  0xb4   :  { %216 = vst [vmem:[%s531_s3 + $0x28] sm:$0xff] %v197_v10 }
  0xb6   :  { %v177_v11 = vpop.f32.mrf.mxu2 }
  0xb7   :  { %v178_v12 = vadd.f32 %v177_v11, %v45_v53  ;;  %v206_v13 = vpop.f32.mrf.mxu3 }
  0xb8   :  { %v207_v14 = vadd.f32 %v206_v13, %v46_v54  ;;  %v169_v15 = vpop.f32.mrf.mxu0 }
  0xb9   :  { %223 = vst [vmem:[%s531_s3 + $0x60] sm:$0xff] %v178_v12  ;;  %v170_v16 = vadd.f32 %v169_v15, %v45_v53  ;;  %v198_v17 = vpop.f32.mrf.mxu1 }
  0xba   :  { %224 = vst [vmem:[%s531_s3 + $0x68] sm:$0xff] %v207_v14  ;;  %v199_v18 = vadd.f32 %v198_v17, %v46_v54 }
  0xbb   :  { %217 = vst [vmem:[%s531_s3 + $0x30] sm:$0xff] %v170_v16 }
  0xbc   :  { %218 = vst [vmem:[%s531_s3 + $0x38] sm:$0xff] %v199_v18 }
  0xbe   :  { %v179_v19 = vpop.f32.mrf.mxu2 }
  0xbf   :  { %v180_v20 = vadd.f32 %v179_v19, %v45_v53  ;;  %v208_v21 = vpop.f32.mrf.mxu3 }
  0xc0   :  { %v209_v22 = vadd.f32 %v208_v21, %v46_v54 }
  0xc1   :  { %225 = vst [vmem:[%s531_s3 + $0x70] sm:$0xff] %v180_v20 }
  0xc2   :  { %226 = vst [vmem:[%s531_s3 + $0x78] sm:$0xff] %v209_v22 }

// kernel: language_model_forward.2
= control target key start
LH: loop header
LB: loop body
LE: loop exit
PB: predicated region body
PF: predicated region fallthrough
CT: control target
= control target key end

     0   :  { %v1265_v2 = vmov 0   ;;  %vm85_vm1 = vcmask 523264   ;;  %s1578_s3 = inlined_call_operand.vmem [shape: bf16[128,128], index: 3, kind: input, shape index: {}]   ;;  %s1579_s2 = inlined_call_operand.vmem [shape: bf16[64,128], index: 2, kind: input, shape index: {}]   ;;  %s1580_s1 = inlined_call_operand.vmem [shape: s32[8,1], index: 1, kind: input, shape index: {}]   ;;  %s1581_s4 = inlined_call_operand.vmem [shape: f32[1,128], index: 4, kind: input, shape index: {}]   ;;  %s1582_s0 = inlined_call_operand.vmem [shape: bf16[8,8,64], index: 0, kind: input, shape index: {}]   ;;  %s1583_s5 = inlined_call_operand.vmem [shape: bf16[8,8,128], index: 5, kind: output, shape index: {}]  }
   0x1   :  { %v1187_v0 = vld [vmem:[%s1578_s3 + $0x38] sm:$0xff]  ;;  %1245 = vset.pattern.permute.xlu0 %v1265_v2  ;;  %1246 = vset.pattern.permute.xlu1 %v1265_v2  ;;  %v1186_v3 = vld [vmem:[%s1578_s3 + $0x30] sm:$0xff]  ;;  %v1314_v5 = vld [vmem:[%s1580_s1] sm:$0xff] }
   0x2   :  { %v1179_v1 = vld [vmem:[%s1579_s2 + $0x18] sm:$0xff]  ;;  %1247 = vset.pattern.permute.xlu2 %v1265_v2  ;;  %201 = vmatpush.bf16.msra.mxu1 %v1187_v0  ;;  %v1178_v4 = vld [vmem:[%s1579_s2 + $0x10] sm:$0xff]  ;;  %vm216_vm0 = vcmp.gt.s32.totalorder %v1314_v5, 0  ;;  %v1185_v7 = vld [vmem:[%s1578_s3 + $0x28] sm:$0xff]  ;;  %vm307_vm2 = vcmp.gt.s32.totalorder %v1314_v5, 1  ;;  %vm399_vm4 = vcmp.gt.s32.totalorder %v1314_v5, 2 }
   0x3   :  { %102 = vmatpush.bf16.msra.mxu0 %v1179_v1  ;;  %v1195_v6 = vld [vmem:[%s1578_s3 + $0x38] sm:$0xff]  ;;  %v1177_v8 = vld [vmem:[%s1579_s2 + $0x8] sm:$0xff]  ;;  %v217_v9 = vsel %vm216_vm0, 1, %v1265_v2  ;;  %v1194_v10 = vld [vmem:[%s1578_s3 + $0x30] sm:$0xff]  ;;  %v308_v25 = vsel %vm307_vm2, 1, %v1265_v2  ;;  %v400_v46 = vsel %vm399_vm4, 1, %v1265_v2 }
   0x4   :  { %219 = vperm.xlu0 %1245, %v217_v9   ;;  %292 = vmatpush.bf16.msra.mxu2 %v1195_v6  ;;  %v1184_v11 = vld [vmem:[%s1578_s3 + $0x20] sm:$0xff]  ;;  %v1193_v13 = vld [vmem:[%s1578_s3 + $0x28] sm:$0xff]  ;;  %v1183_v15 = vld [vmem:[%s1578_s3 + $0x18] sm:$0xff]  ;;  %vm491_vm6 = vcmp.gt.s32.totalorder %v1314_v5, 3  ;;  %vm583_vm8 = vcmp.gt.s32.totalorder %v1314_v5, 4  ;;  %vm675_vm10 = vcmp.gt.s32.totalorder %v1314_v5, 5 }
   0x5   :  { %v1176_v12 = vld [vmem:[%s1579_s2] sm:$0xff]  ;;  %v1182_v16 = vld [vmem:[%s1578_s3 + $0x10] sm:$0xff]  ;;  %v1181_v17 = vld [vmem:[%s1578_s3 + $0x8] sm:$0xff]  ;;  %402 = vperm.xlu1 %1246, %v400_v46   ;;  %v492_v1 = vsel %vm491_vm6, 1, %v1265_v2  ;;  %vm767_vm12 = vcmp.gt.s32.totalorder %v1314_v5, 6  ;;  %vm859_vm14 = vcmp.gt.s32.totalorder %v1314_v5, 7 }
   0x6   :  { %202 = vmatpush.bf16.msra.mxu1 %v1186_v3  ;;  %v1172_v14 = vld [vmem:[%s1582_s0] sm:$0xff]  ;;  %v1191_v20 = vld [vmem:[%s1578_s3 + $0x18] sm:$0xff]  ;;  %v1190_v21 = vld [vmem:[%s1578_s3 + $0x10] sm:$0xff] }
   0x7   :  { %103 = vmatpush.bf16.msra.mxu0 %v1178_v4  ;;  %v1180_v18 = vld [vmem:[%s1578_s3] sm:$0xff]  ;;  %v1189_v22 = vld [vmem:[%s1578_s3 + $0x8] sm:$0xff]  ;;  %v1203_v24 = vld [vmem:[%s1578_s3 + $0x38] sm:$0xff] }
   0x8   :  { %293 = vmatpush.bf16.msra.mxu2 %v1194_v10  ;;  %v1192_v19 = vld [vmem:[%s1578_s3 + $0x20] sm:$0xff]  ;;  %384 = vmatpush.bf16.msra.mxu3 %v1203_v24  ;;  %v1202_v26 = vld [vmem:[%s1578_s3 + $0x30] sm:$0xff]  ;;  %v1201_v27 = vld [vmem:[%s1578_s3 + $0x28] sm:$0xff] }
   0x9   :  { %v1188_v23 = vld [vmem:[%s1578_s3] sm:$0xff]  ;;  %v1199_v30 = vld [vmem:[%s1578_s3 + $0x18] sm:$0xff]  ;;  %v1198_v41 = vld [vmem:[%s1578_s3 + $0x10] sm:$0xff] }
   0xa   :  { %203 = vmatpush.bf16.msra.mxu1 %v1185_v7  ;;  %v1200_v28 = vld [vmem:[%s1578_s3 + $0x20] sm:$0xff]  ;;  %v1197_v42 = vld [vmem:[%s1578_s3 + $0x8] sm:$0xff]  ;;  %v1211_v45 = vld [vmem:[%s1578_s3 + $0x38] sm:$0xff] }
   0xb   :  { %104 = vmatpush.bf16.msra.mxu0 %v1177_v8  ;;  %v1388_v29 = vld [vmem:[%s1581_s4] ss:$0 sm:$0xff]  ;;  %v1173_v43 = vld [vmem:[%s1582_s0 + $0x8] sm:$0xff]  ;;  %v1210_v47 = vld [vmem:[%s1578_s3 + $0x30] sm:$0xff] }
   0xc   :  { %294 = vmatpush.bf16.msra.mxu2 %v1193_v13  ;;  %310 = vperm.xlu0 %1245, %v308_v25   ;;  %v1196_v44 = vld [vmem:[%s1578_s3] sm:$0xff]  ;;  %v1209_v48 = vld [vmem:[%s1578_s3 + $0x28] sm:$0xff]  ;;  %v1207_v60 = vld [vmem:[%s1578_s3 + $0x18] sm:$0xff] }
   0xd   :  { %385 = vmatpush.bf16.msra.mxu3 %v1202_v26  ;;  %v1208_v59 = vld [vmem:[%s1578_s3 + $0x20] sm:$0xff]  ;;  %v1206_v61 = vld [vmem:[%s1578_s3 + $0x10] sm:$0xff]  ;;  %v1205_v62 = vld [vmem:[%s1578_s3 + $0x8] sm:$0xff]  ;;  %494 = vperm.xlu1 %1246, %v492_v1  }
   0xe   :  { %204 = vmatpush.bf16.msra.mxu1 %v1184_v11  ;;  %v1204_v63 = vld [vmem:[%s1578_s3] sm:$0xff]  ;;  %v1219_v0 = vld [vmem:[%s1578_s3 + $0x38] sm:$0xff]  ;;  %v1218_v3 = vld [vmem:[%s1578_s3 + $0x30] sm:$0xff] }
   0xf   :  { %105 = vmatpush.bf16.msra.mxu0 %v1176_v12  ;;  %v1217_v4 = vld [vmem:[%s1578_s3 + $0x28] sm:$0xff]  ;;  %v1216_v6 = vld [vmem:[%s1578_s3 + $0x20] sm:$0xff]  ;;  %v1215_v7 = vld [vmem:[%s1578_s3 + $0x18] sm:$0xff] }
  0x10   :  { %295 = vmatpush.bf16.msra.mxu2 %v1192_v19  ;;  %v1213_v19 = vld [vmem:[%s1578_s3 + $0x8] sm:$0xff]  ;;  %v1226_v24 = vld [vmem:[%s1578_s3 + $0x30] sm:$0xff] }
  0x11   :  { %386 = vmatpush.bf16.msra.mxu3 %v1201_v27  ;;  %v1225_v25 = vld [vmem:[%s1578_s3 + $0x28] sm:$0xff] }
  0x12   :  { %905 = vmatmul.msk.bf16.vlgmr.msra.gmra.mxu0 %vm85_vm1, %v1172_v14  ;;  %205 = vmatpush.bf16.msra.mxu1 %v1183_v15  ;;  %v1233_v46 = vld [vmem:[%s1578_s3 + $0x28] sm:$0xff] }
  0x13   :  { %v1241_v1 = vld [vmem:[%s1578_s3 + $0x28] sm:$0xff] }
  0x14   :  { %296 = vmatpush.bf16.msra.mxu2 %v1191_v20  ;;  %v1174_v20 = vld [vmem:[%s1582_s0 + $0x10] sm:$0xff] }
  0x15   :  { %387 = vmatpush.bf16.msra.mxu3 %v1200_v28 }
  0x16   :  { %206 = vmatpush.bf16.msra.mxu1 %v1182_v16 }
  0x18   :  { %297 = vmatpush.bf16.msra.mxu2 %v1190_v21  ;;  %v1212_v21 = vld [vmem:[%s1578_s3] sm:$0xff] }
  0x19   :  { %388 = vmatpush.bf16.msra.mxu3 %v1199_v30 }
  0x1a   :  { %207 = vmatpush.bf16.msra.mxu1 %v1181_v17 }
  0x1c   :  { %298 = vmatpush.bf16.msra.mxu2 %v1189_v22  ;;  %v1227_v22 = vld [vmem:[%s1578_s3 + $0x38] sm:$0xff] }
  0x1d   :  { %389 = vmatpush.bf16.msra.mxu3 %v1198_v41  ;;  %v1220_v41 = vld [vmem:[%s1578_s3] sm:$0xff] }
  0x1e   :  { %208 = vmatpush.bf16.msra.mxu1 %v1180_v18  ;;  %v1214_v18 = vld [vmem:[%s1578_s3 + $0x10] sm:$0xff] }
  0x20   :  { %299 = vmatpush.bf16.msra.mxu2 %v1188_v23  ;;  %v584_v23 = vsel %vm583_vm8, 1, %v1265_v2 }
  0x21   :  { %209 = vmatmul.bf16.vlgmr.msra.gmra.mxu1 %v1265_v2  ;;  %390 = vmatpush.bf16.msra.mxu3 %v1197_v42  ;;  %v1235_v42 = vld [vmem:[%s1578_s3 + $0x38] sm:$0xff] }
  0x22   :  { %906 = vmatmul.msk.bf16.gmra.mxu0 %vm85_vm1, %v1173_v43  ;;  %476 = vmatpush.bf16.msrb.mxu1 %v1211_v45  ;;  %v676_v43 = vsel %vm675_vm10, 1, %v1265_v2  ;;  %v1234_v45 = vld [vmem:[%s1578_s3 + $0x30] sm:$0xff] }
  0x23   :  { %586 = vperm.xlu2 %1247, %v584_v23   ;;  %752 = vmatpush.bf16.msrb.mxu0 %v1235_v42 }
  0x24   :  { %568 = vmatpush.bf16.msrb.mxu2 %v1219_v0  ;;  %v1242_v0 = vld [vmem:[%s1578_s3 + $0x30] sm:$0xff] }
  0x25   :  { %391 = vmatpush.bf16.msra.mxu3 %v1196_v44  ;;  %v1175_v44 = vld [vmem:[%s1582_s0 + $0x18] sm:$0xff] }
  0x26   :  { %477 = vmatpush.bf16.msrb.mxu1 %v1210_v47  ;;  %v1232_v47 = vld [vmem:[%s1578_s3 + $0x20] sm:$0xff] }
  0x27   :  { %753 = vmatpush.bf16.msrb.mxu0 %v1234_v45 }
  0x28   :  { %569 = vmatpush.bf16.msrb.mxu2 %v1218_v3  ;;  %v1240_v3 = vld [vmem:[%s1578_s3 + $0x20] sm:$0xff] }
  0x29   :  { %660 = vmatpush.bf16.msrb.mxu3 %v1227_v22 }
  0x2a   :  { %478 = vmatpush.bf16.msrb.mxu1 %v1209_v48  ;;  %v1231_v48 = vld [vmem:[%s1578_s3 + $0x18] sm:$0xff] }
  0x2b   :  { %678 = vperm.xlu2 %1247, %v676_v43   ;;  %754 = vmatpush.bf16.msrb.mxu0 %v1233_v46 }
  0x2c   :  { %570 = vmatpush.bf16.msrb.mxu2 %v1217_v4  ;;  %v1239_v4 = vld [vmem:[%s1578_s3 + $0x18] sm:$0xff] }
  0x2d   :  { %661 = vmatpush.bf16.msrb.mxu3 %v1226_v24 }
  0x2e   :  { %479 = vmatpush.bf16.msrb.mxu1 %v1208_v59 }
  0x2f   :  { %755 = vmatpush.bf16.msrb.mxu0 %v1232_v47 }
  0x30   :  { %571 = vmatpush.bf16.msrb.mxu2 %v1216_v6 }
  0x31   :  { %662 = vmatpush.bf16.msrb.mxu3 %v1225_v25 }
  0x32   :  { %480 = vmatpush.bf16.msrb.mxu1 %v1207_v60  ;;  %907 = vmatmul.msk.bf16.gmra.mxu0 %vm85_vm1, %v1174_v20  ;;  %v860_v20 = vsel %vm859_vm14, 1, %v1265_v2 }
  0x33   :  { %756 = vmatpush.bf16.msrb.mxu0 %v1231_v48  ;;  %862 = vperm.xlu1 %1246, %v860_v20  }
  0x34   :  { %572 = vmatpush.bf16.msrb.mxu2 %v1215_v7 }
  0x36   :  { %481 = vmatpush.bf16.msrb.mxu1 %v1206_v61  ;;  %v1228_v61 = vld [vmem:[%s1578_s3] sm:$0xff] }
  0x38   :  { %573 = vmatpush.bf16.msrb.mxu2 %v1214_v18  ;;  %v1236_v18 = vld [vmem:[%s1578_s3] sm:$0xff] }
  0x3a   :  { %482 = vmatpush.bf16.msrb.mxu1 %v1205_v62  ;;  %v1243_v62 = vld [vmem:[%s1578_s3 + $0x38] sm:$0xff] }
  0x3c   :  { %574 = vmatpush.bf16.msrb.mxu2 %v1213_v19 }
  0x3e   :  { %483 = vmatpush.bf16.msrb.mxu1 %v1204_v63  ;;  %v768_v63 = vsel %vm767_vm12, 1, %v1265_v2 }
  0x3f   :  { %770 = vperm.xlu0 %1245, %v768_v63  }
  0x40   :  { %575 = vmatpush.bf16.msrb.mxu2 %v1212_v21 }
  0x42   :  { %908 = vmatmul.msk.bf16.gmra.mxu0 %vm85_vm1, %v1175_v44  ;;  %844 = vmatpush.bf16.msra.mxu1 %v1243_v62 }
  0x46   :  { %845 = vmatpush.bf16.msra.mxu1 %v1242_v0 }
  0x4a   :  { %846 = vmatpush.bf16.msra.mxu1 %v1241_v1 }
  0x4e   :  { %847 = vmatpush.bf16.msra.mxu1 %v1240_v3 }
  0x52   :  { %848 = vmatpush.bf16.msra.mxu1 %v1239_v4 }
  0x76   :  { %v220_v35 = vpop.permute.xlu0 %219 }
  0x77   :  { %vm221_vm3 = vcmp.eq.s32.totalorder %v220_v35, 1  ;;  %v403_v12 = vpop.permute.xlu1 %402 }
  0x78   :  { %vm404_vm7 = vcmp.eq.s32.totalorder %v403_v12, 1 }
  0x7e   :  { %v311_v53 = vpop.permute.xlu0 %310 }
  0x7f   :  { %vm312_vm5 = vcmp.eq.s32.totalorder %v311_v53, 1 }
  0x8f   :  { %v107_v31 = vpop.f32.mrf.mxu0 }
  0x90   :  { %v108_v32 = vadd.f32 %v1388_v29, %v107_v31  ;;  %v495_v31 = vpop.permute.xlu1 %494 }
  0x91   :  { %vm496_vm9 = vcmp.eq.s32.totalorder %v495_v31, 1 }
  0x97   :  { %v109_v49 = vpop.f32.mrf.mxu0 }
  0x98   :  { %v110_v50 = vadd.f32 %v1388_v29, %v109_v49 }
  0x9e   :  { %v210_v33 = vpop.f32.mrf.mxu1 }
  0x9f   :  { %v214_v34 = vadd.f32 %v210_v33, %v108_v32  ;;  %v112_v8 = vpop.f32.mrf.mxu0 }
  0xa0   :  { %v113_v9 = vadd.f32 %v1388_v29, %v112_v8 }
  0xa1   :  { %1249 = vtanh.f32 %v214_v34 }
  0xa6   :  { %v212_v36 = vpop.f32.mrf.mxu1 }
  0xa7   :  { %v1250_v37 = vpop.eup %1249  ;;  %v114_v26 = vpop.f32.mrf.mxu0 }
  0xa8   :  { %v222_v38 = vsel %vm221_vm3, %v1250_v37, 0.0  ;;  %v227_v39 = vpack.c.bf16 %v1250_v37, %v1250_v37  ;;  %v115_v27 = vadd.f32 %v1388_v29, %v114_v26  ;;  %v1224_v37 = vld [vmem:[%s1578_s3 + $0x20] sm:$0xff] }
  0xa9   :  { %v223_v40 = vpack.c.bf16 %v222_v38, %v222_v38  ;;  %663 = vmatpush.bf16.msrb.mxu3 %v1224_v37  ;;  %v1223_v38 = vld [vmem:[%s1578_s3 + $0x18] sm:$0xff] }
  0xaa   :  { %300 = vmatmul.bf16.vlgmr.msra.gmra.mxu2 %v227_v39  ;;  %v1222_v39 = vld [vmem:[%s1578_s3 + $0x10] sm:$0xff] }
  0xab   :  { %224 = vst [vmem:[%s1583_s5] sm:$0xf] %v223_v40  ;;  %v1221_v40 = vld [vmem:[%s1578_s3 + $0x8] sm:$0xff] }
  0xad   :  { %664 = vmatpush.bf16.msrb.mxu3 %v1223_v38 }
  0xaf   :  { %v117_v49 = vpop.f32.mrf.mxu0 }
  0xb1   :  { %665 = vmatpush.bf16.msrb.mxu3 %v1222_v39  ;;  %v771_v25 = vpop.permute.xlu0 %770 }
  0xb2   :  { %vm772_vm15 = vcmp.eq.s32.totalorder %v771_v25, 1 }
  0xb5   :  { %666 = vmatpush.bf16.msrb.mxu3 %v1221_v40 }
  0xb7   :  { %v119_v6 = vpop.f32.mrf.mxu0 }
  0xb8   :  { %v120_v7 = vadd.f32 %v1388_v29, %v119_v6 }
  0xb9   :  { %667 = vmatpush.bf16.msrb.mxu3 %v1220_v41 }
  0xbf   :  { %v122_v19 = vpop.f32.mrf.mxu0 }
  0xc0   :  { %v123_v22 = vadd.f32 %v1388_v29, %v122_v19 }
  0xc7   :  { %v124_v21 = vpop.f32.mrf.mxu0 }
  0xc8   :  { %v125_v2 = vadd.f32 %v1388_v29, %v124_v21 }
 0x12d   :  { %v301_v51 = vpop.f32.mrf.mxu2 }
 0x12e   :  { %v305_v52 = vadd.f32 %v301_v51, %v110_v50  ;;  %v118_v50 = vadd.f32 %v1388_v29, %v117_v49  ;;  %v1230_v51 = vld [vmem:[%s1578_s3 + $0x10] sm:$0xff] }
 0x12f   :  { %757 = vmatpush.bf16.msrb.mxu0 %v1230_v51 }
 0x130   :  { %1251 = vtanh.f32 %v305_v52 }
 0x135   :  { %v303_v54 = vpop.f32.mrf.mxu2 }
 0x136   :  { %v1252_v55 = vpop.eup %1251  ;;  %v1229_v54 = vld [vmem:[%s1578_s3 + $0x8] sm:$0xff] }
 0x137   :  { %v313_v56 = vsel %vm312_vm5, %v1252_v55, 0.0  ;;  %v319_v57 = vpack.c.bf16 %v1252_v55, %v1252_v55  ;;  %v587_v55 = vpop.permute.xlu2 %586  ;;  %758 = vmatpush.bf16.msrb.mxu0 %v1229_v54 }
 0x138   :  { %v314_v58 = vpack.c.bf16 %v313_v56, %v313_v56  ;;  %vm588_vm11 = vcmp.eq.s32.totalorder %v587_v55, 1 }
 0x139   :  { %392 = vmatmul.bf16.vlgmr.msra.gmra.mxu3 %v319_v57 }
 0x13a   :  { %973 = vst [vmem:[%s1583_s5 + $0x4] sm:$0xf] %v314_v58 }
 0x13b   :  { %759 = vmatpush.bf16.msrb.mxu0 %v1228_v61 }
 0x1bc   :  { %v393_v10 = vpop.f32.mrf.mxu3 }
 0x1bd   :  { %v397_v11 = vadd.f32 %v393_v10, %v113_v9  ;;  %v679_v10 = vpop.permute.xlu2 %678 }
 0x1be   :  { %vm680_vm13 = vcmp.eq.s32.totalorder %v679_v10, 1 }
 0x1bf   :  { %1253 = vtanh.f32 %v397_v11 }
 0x1c4   :  { %v395_v13 = vpop.f32.mrf.mxu3 }
 0x1c5   :  { %v1254_v14 = vpop.eup %1253 }
 0x1c6   :  { %v405_v15 = vsel %vm404_vm7, %v1254_v14, 0.0  ;;  %v411_v16 = vpack.c.bf16 %v1254_v14, %v1254_v14 }
 0x1c7   :  { %v406_v17 = vpack.c.bf16 %v405_v15, %v405_v15 }
 0x1c8   :  { %484 = vmatmul.bf16.vlgmr.msrb.gmra.mxu1 %v411_v16  ;;  %v1238_v16 = vld [vmem:[%s1578_s3 + $0x10] sm:$0xff] }
 0x1c9   :  { %1006 = vst [vmem:[%s1583_s5 + $0x8] sm:$0xf] %v406_v17  ;;  %849 = vmatpush.bf16.msra.mxu1 %v1238_v16  ;;  %v1237_v17 = vld [vmem:[%s1578_s3 + $0x8] sm:$0xff] }
 0x1cd   :  { %850 = vmatpush.bf16.msra.mxu1 %v1237_v17 }
 0x1d1   :  { %851 = vmatpush.bf16.msra.mxu1 %v1236_v18 }
 0x245   :  { %v485_v28 = vpop.f32.mrf.mxu1 }
 0x246   :  { %v489_v30 = vadd.f32 %v485_v28, %v115_v27 }
 0x248   :  { %1255 = vtanh.f32 %v489_v30 }
 0x24d   :  { %v487_v32 = vpop.f32.mrf.mxu1 }
 0x24e   :  { %v1256_v33 = vpop.eup %1255 }
 0x24f   :  { %v497_v34 = vsel %vm496_vm9, %v1256_v33, 0.0  ;;  %v503_v35 = vpack.c.bf16 %v1256_v33, %v1256_v33  ;;  %v863_v33 = vpop.permute.xlu1 %862 }
 0x250   :  { %v498_v36 = vpack.c.bf16 %v497_v34, %v497_v34  ;;  %vm864_vm0 = vcmp.eq.s32.totalorder %v863_v33, 1 }
 0x251   :  { %576 = vmatmul.bf16.vlgmr.msrb.gmra.mxu2 %v503_v35 }
 0x252   :  { %1039 = vst [vmem:[%s1583_s5 + $0xc] sm:$0xf] %v498_v36 }
 0x2d4   :  { %v577_v52 = vpop.f32.mrf.mxu2 }
 0x2d5   :  { %v581_v53 = vadd.f32 %v577_v52, %v118_v50 }
 0x2d7   :  { %1257 = vtanh.f32 %v581_v53 }
 0x2dc   :  { %v579_v56 = vpop.f32.mrf.mxu2 }
 0x2dd   :  { %v1258_v57 = vpop.eup %1257 }
 0x2de   :  { %v589_v58 = vsel %vm588_vm11, %v1258_v57, 0.0  ;;  %v595_v59 = vpack.c.bf16 %v1258_v57, %v1258_v57 }
 0x2df   :  { %v590_v60 = vpack.c.bf16 %v589_v58, %v589_v58 }
 0x2e0   :  { %668 = vmatmul.bf16.vlgmr.msrb.gmra.mxu3 %v595_v59 }
 0x2e1   :  { %1072 = vst [vmem:[%s1583_s5 + $0x10] sm:$0xf] %v590_v60 }
 0x363   :  { %v669_v8 = vpop.f32.mrf.mxu3 }
 0x364   :  { %v673_v9 = vadd.f32 %v669_v8, %v120_v7 }
 0x366   :  { %1259 = vtanh.f32 %v673_v9 }
 0x36b   :  { %v671_v11 = vpop.f32.mrf.mxu3 }
 0x36c   :  { %v1260_v12 = vpop.eup %1259 }
 0x36d   :  { %v681_v13 = vsel %vm680_vm13, %v1260_v12, 0.0  ;;  %v687_v14 = vpack.c.bf16 %v1260_v12, %v1260_v12 }
 0x36e   :  { %v682_v15 = vpack.c.bf16 %v681_v13, %v681_v13 }
 0x36f   :  { %760 = vmatmul.bf16.vlgmr.msrb.gmra.mxu0 %v687_v14 }
 0x370   :  { %1105 = vst [vmem:[%s1583_s5 + $0x14] sm:$0xf] %v682_v15 }
 0x3ec   :  { %v761_v23 = vpop.f32.mrf.mxu0 }
 0x3ed   :  { %v765_v24 = vadd.f32 %v761_v23, %v123_v22 }
 0x3ef   :  { %1261 = vtanh.f32 %v765_v24 }
 0x3f4   :  { %v763_v26 = vpop.f32.mrf.mxu0 }
 0x3f5   :  { %v1262_v27 = vpop.eup %1261 }
 0x3f6   :  { %v773_v28 = vsel %vm772_vm15, %v1262_v27, 0.0  ;;  %v779_v30 = vpack.c.bf16 %v1262_v27, %v1262_v27 }
 0x3f7   :  { %v774_v31 = vpack.c.bf16 %v773_v28, %v773_v28 }
 0x3f8   :  { %852 = vmatmul.bf16.vlgmr.msra.gmra.mxu1 %v779_v30 }
 0x3f9   :  { %1138 = vst [vmem:[%s1583_s5 + $0x18] sm:$0xf] %v774_v31 }
 0x475   :  { %v853_v5 = vpop.f32.mrf.mxu1 }
 0x476   :  { %v857_v32 = vadd.f32 %v853_v5, %v125_v2 }
 0x478   :  { %1263 = vtanh.f32 %v857_v32 }
 0x47d   :  { %v855_v34 = vpop.f32.mrf.mxu1 }
 0x47e   :  { %v1264_v35 = vpop.eup %1263 }
 0x47f   :  { %v865_v36 = vsel %vm864_vm0, %v1264_v35, 0.0 }
 0x480   :  { %v866_v37 = vpack.c.bf16 %v865_v36, %v865_v36 }
 0x482   :  { %1171 = vst [vmem:[%s1583_s5 + $0x1c] sm:$0xf] %v866_v37 }

</bundles_post_ra>
